<compile_context>
chip_gen: v7x
topology: tpu7x:2x2x1
jax: 0.10.0
libtpu: 0.0.40
codegen_flags: <defaults>
</compile_context>

<pallas_src>
import functools

import jax
import jax.numpy as jnp
from jax.experimental import pallas as pl
from jax.experimental.pallas import tpu as pltpu

_LANE = 128
_MIN_PALLAS_OUT_ROWS = 256   # below this, per-pallas_call overhead dominates


def _round_up(x, m):
    return ((x + m - 1) // m) * m


def _round_down(x, m):
    return (x // m) * m


@functools.lru_cache(maxsize=None)
def _vmem_capacity_bytes():
    """Per-TensorCore VMEM capacity; conservative default if query fails."""
    try:
        return int(pltpu.get_tpu_info().vmem_capacity_bytes)
    except Exception:
        return 64 * 1024 * 1024          # v7x per-core VMEM (safe everywhere)


def _linear_mu_kernel(x_ref, w_ref, b_ref, out_ref, mu_ref):
    """Grid = (batch tiles, n). Compute mu once per tile, store it per repeat r."""
    # x_ref: (tile_b, D)  w_ref: (D, O_pad)  b_ref: (1, O_pad)
    # out_ref: (tile_b, O_pad) lane band r   mu_ref: (tile_b, O_pad) f32 scratch
    @pl.when(pl.program_id(1) == 0)
    def _():
        mu_ref[...] = (
            jnp.dot(x_ref[...], w_ref[...], preferred_element_type=jnp.float32)
            + b_ref[...].astype(jnp.float32)
        )

    out_ref[...] = mu_ref[...].astype(out_ref.dtype)


def _choose_tile_b(B, D, O_pad, itemsize, sublane, vmem_budget_bytes):
    """Largest sublane-aligned batch tile whose padded working set fits the budget.

    Returns None if the pinned weight alone would blow the budget (caller must
    fall back to plain XLA instead of failing to compile).
    """
    d_lanes = _round_up(D, _LANE)
    d_sub = _round_up(D, sublane)
    # W + bias are double-buffered by the default pipeline even with a constant
    # index_map: account the full 2x.
    fixed = 2 * itemsize * (d_sub * O_pad + sublane * O_pad)
    if fixed > vmem_budget_bytes // 2:
        return None                                  # cannot pin weight in VMEM
    # Per batch-row VMEM: x tile (2x buffered) + out band (2x) + f32 mu scratch.
    per_row = itemsize * (2 * d_lanes + 2 * O_pad) + 4 * O_pad
    tile = (vmem_budget_bytes - fixed) // per_row
    tile = min(tile, 1024)                           # HBM-roofline sweet spot
    tile = max(sublane, _round_down(tile, sublane))
    if B > 2 * sublane:
        # Keep >= ~4 grid steps so v7x's two TensorCores and the DMA double
        # buffering both have work; costs nothing on v5e/v6e.
        tile = min(tile, max(sublane, _round_down(pl.cdiv(B, 4), sublane)))
    if tile >= B:
        return B                                     # full-extent block: always legal
    return int(tile)


@functools.partial(jax.jit, static_argnames=("n", "force_pallas"))
def linear_mu_forward(x, weight_t, bias, n, force_pallas=False):
    """LinearMu.forward(x, n).

    x:        (batch, inp_dim)
    weight_t: (inp_dim, out_dim)   -- PyTorch nn.Linear weight, transposed
    bias:     (out_dim,)
    returns:  (batch * n, out_dim) == repeat_interleave(x @ weight_t + bias, n, dim=0)
    """
    B, D = x.shape
    assert weight_t.shape[0] == D, (weight_t.shape, D)
    O = weight_t.shape[1]
    assert bias.shape == (O,), bias.shape
    assert n >= 1

    itemsize = jnp.dtype(x.dtype).itemsize
    sublane = {4: 8, 2: 16, 1: 32}.get(itemsize, 8)
    O_pad = _round_up(O, _LANE)

    capacity = _vmem_capacity_bytes()
    tile_b = _choose_tile_b(B, D, O_pad, itemsize, sublane, int(0.4 * capacity))

    small = B * n < _MIN_PALLAS_OUT_ROWS
    if tile_b is None or (small and not force_pallas):
        # Tiny problem or un-pinnable weight: fused XLA matmul + repeat.
        return jnp.repeat(x @ weight_t + bias.astype(x.dtype), n, axis=0)

    if O_pad != O:
        # Pad to full 128-lane bands so MXU output and stores stay unmasked.
        weight_t = jnp.pad(weight_t, ((0, 0), (0, O_pad - O)))
        bias = jnp.pad(bias, (0, O_pad - O))
    b2d = bias.reshape(1, O_pad)

    grid = (pl.cdiv(B, tile_b), n)
    cost = pl.CostEstimate(
        flops=2 * B * D * O_pad,
        transcendentals=0,
        bytes_accessed=itemsize * (B * D + D * O_pad + O_pad + B * n * O_pad),
    )

    out2d = pl.pallas_call(
        _linear_mu_kernel,
        out_shape=jax.ShapeDtypeStruct((B, n * O_pad), x.dtype),
        grid_spec=pltpu.PrefetchScalarGridSpec(
            num_scalar_prefetch=0,
            grid=grid,
            in_specs=[
                pl.BlockSpec((tile_b, D), lambda i, r: (i, 0)),   # x: tiled over batch
                pl.BlockSpec((D, O_pad), lambda i, r: (0, 0)),    # W: resident in VMEM
                pl.BlockSpec((1, O_pad), lambda i, r: (0, 0)),    # bias: resident
            ],
            out_specs=pl.BlockSpec((tile_b, O_pad), lambda i, r: (i, r)),
            scratch_shapes=[pltpu.VMEM((tile_b, O_pad), jnp.float32)],
        ),
        compiler_params=pltpu.CompilerParams(
            dimension_semantics=("parallel", "arbitrary"),
            vmem_limit_bytes=int(0.75 * capacity),
        ),
        cost_estimate=cost,
    )(x, weight_t, b2d)

    # (B, n*O_pad) -> (B*n, O_pad): row b*n+r is band r of row b, i.e. exactly
    # the repeat_interleave ordering; then drop lane padding (if any).
    out = out2d.reshape(B * n, O_pad)
    if O_pad != O:
        out = out[:, :O]
    return out


def linear_mu_control(x, weight_t, bias):
    """LinearMu.control(x) == forward with n = 1."""
    return linear_mu_forward(x, weight_t, bias, n=1)


if __name__ == "__main__":
    key = jax.random.PRNGKey(0)

    # --- tiny shapes implied by the module (forced through the Pallas path) ---
    batch, inp_dim, out_dim, n = 2, 32, 8, 3
    kx, kw, kb = jax.random.split(key, 3)
    x = jax.random.normal(kx, (batch, inp_dim), dtype=jnp.float32)

    # Spec init (init_weights): weight = 0, bias = 0 -> output must be all zeros.
    w0_t = jnp.zeros((inp_dim, out_dim), jnp.float32)
    b0 = jnp.zeros((out_dim,), jnp.float32)
    out0 = jax.block_until_ready(linear_mu_forward(x, w0_t, b0, n, force_pallas=True))
    assert out0.shape == (batch * n, out_dim), out0.shape
    assert jnp.allclose(out0, 0.0), "zero-init output must be zero"

    # Random params to actually check the math (same forward semantics).
    w_t = jax.random.normal(kw, (inp_dim, out_dim), dtype=jnp.float32) * 0.1
    b = jax.random.normal(kb, (out_dim,), dtype=jnp.float32) * 0.1
    out = jax.block_until_ready(linear_mu_forward(x, w_t, b, n, force_pallas=True))
    ref = jnp.repeat(
        jnp.dot(x, w_t, precision=jax.lax.Precision.HIGHEST) + b, n, axis=0
    )
    assert out.shape == (batch * n, out_dim), out.shape
    assert jnp.allclose(out, ref, atol=2e-2), "mismatch vs reference (tiny)"

    # --- larger, tile-aligned shapes: multi-step pipelined 2-D grid ---
    B2, D2, O2, n2 = 1024, 128, 128, 2
    kx2, kw2, kb2 = jax.random.split(jax.random.PRNGKey(1), 3)
    x2 = jax.random.normal(kx2, (B2, D2), dtype=jnp.float32)
    w2_t = jax.random.normal(kw2, (D2, O2), dtype=jnp.float32) * 0.05
    b2 = jax.random.normal(kb2, (O2,), dtype=jnp.float32) * 0.05
    out2 = jax.block_until_ready(linear_mu_forward(x2, w2_t, b2, n2))
    ref2 = jnp.repeat(
        jnp.dot(x2, w2_t, precision=jax.lax.Precision.HIGHEST) + b2, n2, axis=0
    )
    assert out2.shape == (B2 * n2, O2), out2.shape
    assert jnp.allclose(out2, ref2, atol=2e-2), "mismatch vs reference (large)"

    # control() path (n = 1); tiny size routes through the fused-XLA fallback.
    ctrl = jax.block_until_ready(linear_mu_control(x, w_t, b))
    assert jnp.allclose(
        ctrl, jnp.dot(x, w_t, precision=jax.lax.Precision.HIGHEST) + b, atol=2e-2
    ), "mismatch vs reference (control)"

    print("KERNEL_OK")
</pallas_src>

<mosaic_0001>
module attributes {stable_mosaic.version = 11 : i64} {
  func.func @_linear_mu_kernel(%arg0: i32, %arg1: i32, %arg2: memref<2x32xf32, #tpu.memory_space<vmem>>, %arg3: memref<32x128xf32, #tpu.memory_space<vmem>>, %arg4: memref<1x128xf32, #tpu.memory_space<vmem>>, %arg5: memref<2x128xf32, #tpu.memory_space<vmem>>, %arg6: memref<2x128xf32, #tpu.memory_space<vmem>>) attributes {dimension_semantics = [#tpu.dimension_semantics<parallel>, #tpu.dimension_semantics<arbitrary>], iteration_bounds = array<i64: 1, 3>, scalar_prefetch = 0 : i64, scratch_operands = 1 : i64, tpu.core_type = #tpu.core_type<tc>, window_params = [{transform_indices = @transform_0, window_bounds = array<i64: 2, 32>}, {pipeline_mode = #tpu.pipeline_mode<synchronous>, transform_indices = @transform_1, window_bounds = array<i64: 32, 128>}, {pipeline_mode = #tpu.pipeline_mode<synchronous>, transform_indices = @transform_2, window_bounds = array<i64: 1, 128>}, {transform_indices = @transform_3, window_bounds = array<i64: 2, 128>}]} {
    %c0_i32 = arith.constant 0 : i32
    %0 = arith.cmpi eq, %arg1, %c0_i32 : i32
    %1 = arith.extui %0 : i1 to i32
    %c0_i32_0 = arith.constant 0 : i32
    %2 = arith.cmpi ne, %1, %c0_i32_0 : i32
    scf.if %2 {
      %c0_4 = arith.constant 0 : index
      %c0_5 = arith.constant 0 : index
      %5 = vector.load %arg2[%c0_4, %c0_5] : memref<2x32xf32, #tpu.memory_space<vmem>>, vector<2x32xf32>
      %c0_6 = arith.constant 0 : index
      %c0_7 = arith.constant 0 : index
      %6 = vector.load %arg3[%c0_6, %c0_7] : memref<32x128xf32, #tpu.memory_space<vmem>>, vector<32x128xf32>
      %cst = arith.constant dense<0.000000e+00> : vector<2x128xf32>
      %7 = tpu.matmul %5, %6, %cst {dimension_numbers = #tpu.dot_dimension_numbers<[1], [0], [0], [1], [0, 0, 1, 1], [], []>} : vector<2x32xf32>, vector<32x128xf32>, vector<2x128xf32> -> vector<2x128xf32>
      %c0_8 = arith.constant 0 : index
      %c0_9 = arith.constant 0 : index
      %8 = vector.load %arg4[%c0_8, %c0_9] : memref<1x128xf32, #tpu.memory_space<vmem>>, vector<1x128xf32>
      %9 = vector.broadcast %8 : vector<1x128xf32> to vector<2x128xf32>
      %10 = arith.addf %7, %9 : vector<2x128xf32>
      %c0_10 = arith.constant 0 : index
      %c0_11 = arith.constant 0 : index
      %11 = vector.load %arg6[%c0_10, %c0_11] : memref<2x128xf32, #tpu.memory_space<vmem>>, vector<2x128xf32>
      tpu.vector_store %arg6[%c0_10, %c0_11], %10 {strides = array<i32>} : memref<2x128xf32, #tpu.memory_space<vmem>>, vector<2x128xf32>,
    } else {
    }
    %c0 = arith.constant 0 : index
    %c0_1 = arith.constant 0 : index
    %3 = vector.load %arg6[%c0, %c0_1] : memref<2x128xf32, #tpu.memory_space<vmem>>, vector<2x128xf32>
    %c0_2 = arith.constant 0 : index
    %c0_3 = arith.constant 0 : index
    %4 = vector.load %arg5[%c0_2, %c0_3] : memref<2x128xf32, #tpu.memory_space<vmem>>, vector<2x128xf32>
    tpu.vector_store %arg5[%c0_2, %c0_3], %3 {strides = array<i32>} : memref<2x128xf32, #tpu.memory_space<vmem>>, vector<2x128xf32>,
    return
  }
  func.func @transform_0(%arg0: i32, %arg1: i32) -> (i32, i32) {
    %c0_i32 = arith.constant 0 : i32
    %c0_i32_0 = arith.constant 0 : i32
    return %arg0, %c0_i32 : i32, i32
  }
  func.func @transform_1(%arg0: i32, %arg1: i32) -> (i32, i32) {
    %c0_i32 = arith.constant 0 : i32
    %c0_i32_0 = arith.constant 0 : i32
    %c0_i32_1 = arith.constant 0 : i32
    return %c0_i32, %c0_i32_0 : i32, i32
  }
  func.func @transform_2(%arg0: i32, %arg1: i32) -> (i32, i32) {
    %c0_i32 = arith.constant 0 : i32
    %c0_i32_0 = arith.constant 0 : i32
    %c0_i32_1 = arith.constant 0 : i32
    return %c0_i32, %c0_i32_0 : i32, i32
  }
  func.func @transform_3(%arg0: i32, %arg1: i32) -> (i32, i32) {
    %c0_i32 = arith.constant 0 : i32
    return %arg0, %arg1 : i32, i32
  }
}

</mosaic_0001>

<bundles_post_ra>
// kernel: linear_mu_forward.1
= control target key start
LH: loop header
LB: loop body
LE: loop exit
PB: predicated region body
PF: predicated region fallthrough
CT: control target
= control target key end

     0   :  { %s469_s12 = smov 0   ;;  %s471_s13 = smov 0   ;;  %s517_s0 = inlined_call_operand.vmem [shape: f32[2,32], index: 0, kind: input, shape index: {}]   ;;  %s518_s1 = inlined_call_operand.vmem [shape: f32[32,128], index: 1, kind: input, shape index: {}]   ;;  %s519_s2 = inlined_call_operand.vmem [shape: f32[1,128], index: 2, kind: input, shape index: {}]   ;;  %s520_s3 = inlined_call_operand.vmem [shape: f32[2,384], index: 3, kind: output, shape index: {}]  }
   0x1   :  { %s473_s14 = smov 0  }
   0x2 LB: > { %s22_s15 = sadd.s32 1, %s440_s13  ;;  %p366_p0 = scmp.ge.s32.totalorder %s444_s14, 1  ;;  %s444_s14 = sphi %s473_s14, %s13_s14   ;;  %s440_s13 = sphi %s471_s13, %s522_s13   ;;  %s436_s12 = sphi %s469_s12, %s521_s12  }
   0x3   : > { %p23_p1 = scmp.ge.s32.totalorder %s22_s15, 3  ;;  %p150_p2 = scmp.lt.s32.totalorder %s444_s14, 4 }
   0x5   : > { %s524_s15 = smov (%p23_p1, %s22_s15), 0  ;;  %p151_p3 = pnand %p366_p0, %p150_p2 }
   0x6   : > { %p182_p4 = scmp.lt.s32.totalorder (!%p151_p3), %s436_s12, 2  ;;  %p368_p5 = scmp.ne.s32.totalorder (!%p151_p3), %s436_s12, 0 }
   0x7   : > { %154 = sbr.rel (%p151_p3) target bundleno = 248 (0xf8), region = 32 }
   0xe   : > { %s183_s16 = scalar_select %p182_p4, %s436_s12, 2 }
   0xf   : > { %191 = sbr.rel (%p368_p5) target bundleno = 240 (0xf0), region = 36  ;;  %v193_v0 = vld [vmem:[%s518_s1] sm:$0xff] (!%p368_p5)  ;;  %v194_v1 = vld [vmem:[%s518_s1 + $0x8] sm:$0xff] (!%p368_p5)  ;;  %v195_v2 = vld [vmem:[%s518_s1 + $0x10] sm:$0xff] (!%p368_p5)  ;;  %v446_v3 = vmov (!%p368_p5), 0.0|0.0   ;;  %vm447_vm0 = vmmov (!%p368_p5), 0  }
  0x10   : > { %s367_s17 = sshll.u32 %s183_s16, 1  ;;  %389 = vmatprep.subr.bf16.mxu0 (!%p368_p5), %v446_v3  ;;  %v390_v4 = vpack.c.bf16 (!%p368_p5), %v194_v1, %v193_v0  ;;  %v196_v5 = vld [vmem:[%s518_s1 + $0x18] sm:$0xff] (!%p368_p5)  ;;  %v448_v6 = vmov (!%p368_p5), 0.0   ;;  %v192_v8 = vld [vmem:[%s517_s0] sm:$0x3] (!%p368_p5)  ;;  %vm204_vm1 = vcmask (!%p368_p5), 261120  }
  0x11   : > { %s187_s20 = scalar_lea.vmem %s520_s3, %s367_s17  ;;  %386 = vmatprep.mubr.msk.f32.mxu0 (!%p368_p5), %vm447_vm0, %v448_v6  ;;  %v393_v7 = vpack.c.bf16 (!%p368_p5), %v196_v5, %v195_v2  ;;  %v369_v9 = vld [vmem:[%s519_s2] ss:$0 sm:$0xff] (!%p368_p5) }
  0x12   : > { %391 = vmatpush3.bf16.msra.mxu0 (!%p368_p5), %v390_v4 }
  0x13   : > { %392 = vmatprep.subr.bf16.mxu0 (!%p368_p5), %v446_v3 }
  0x16   : > { %394 = vmatpush3.bf16.msra.mxu0 %v393_v7 }
  0x19   : > { %387 = vmatmul.mubr.msk.f32.vlgmr.msra.gmra.mrb[0].mxu0 %vm204_vm1, %v192_v8 }
  0xec   : > { %v274_v10 = vpop.f32.mrb[0].mxu0 }
  0xed   : > { %v275_v11 = vadd.f32 %v369_v9, %v274_v10  ;;  %v388_v12 = vpop.f32.mrb[1].mxu0 }
  0xef   : > { %278 = vst [vmem:[#allocation2] sm:$0x3] %v275_v11 }
  0xf0 PF:  {}
  0xf6   : > { %v279_v13 = vld [vmem:[#allocation2] sm:$0x3] }
  0xf7   : > { %280 = vst [vmem:[%s187_s20] sm:$0x3] %v279_v13 }
  0xf8 PF: > { %s13_s14 = sadd.s32 1, %s444_s14   ;;  %s521_s12 = smov %s440_s13 }
  0xf9   : > { %p10_p6 = scmp.ge.s32.totalorder %s13_s14, 5   ;;  %s522_s13 = smov %s524_s15 }
  0xfb   :  { %12 = sbr.rel (!%p10_p6) target bundleno = 2 (0x2), region = 66 }

</bundles_post_ra>
